<compile_context>
chip_gen: v5e
topology: v5e:2x2
jax: 0.10.0
libtpu: 0.0.40
codegen_flags: <defaults>
</compile_context>

<pallas_src>
import jax
import jax.numpy as jnp
from jax import lax
from jax.experimental import pallas as pl
from jax.experimental.pallas import tpu as pltpu


def _concat_conv_matmul_kernel(w_ref, patch_ref, b_ref, o_ref):
    """One weight-stationary MXU contraction + f32 bias, lane-dense output.

    w_ref     : VMEM (Cout, K)  bf16  im2col-flattened conv weights (data channels only)
    patch_ref : VMEM (K, M)     bf16  im2col slab, M = N*Hout*Wout on the lane axis
    b_ref     : VMEM (Cout, 1)  f32   bias + folded time-channel term
    o_ref     : VMEM (Cout, M)  f32   lane-dense result
    """
    acc = jnp.dot(w_ref[...], patch_ref[...],
                  preferred_element_type=jnp.float32)        # (Cout, M) f32, single MXU pass
    o_ref[...] = acc + b_ref[...]                            # lane-broadcast f32 bias add


def _pad(v, m):
    return ((v + m - 1) // m) * m


def concat_conv2d(t, x_nchw, weight_oihw, bias):
    """t: scalar, x: (N, Cin, H, W), weight: (Cout, Cin+1, KH, KW), bias: (Cout,)."""
    # TODO(synk): transpose=True (ConvTranspose2d) and non-default
    # stride/padding/dilation/groups are not implemented; the time-channel
    # bias fold below is only valid for stride=1, padding=0, dilation=1,
    # groups=1 and a spatially-constant scalar t (the module defaults).
    N, Cin, H, W = x_nchw.shape
    Cout, Cin1, KH, KW = weight_oihw.shape
    assert Cin1 == Cin + 1, "weight must have dim_in + 1 input channels"
    Hout, Wout = H - KH + 1, W - KW + 1          # ksize=3, stride=1, padding=0, dilation=1
    K = KH * KW * Cin
    M = N * Hout * Wout

    # Fold the spatially-constant time channel into an effective bias (f32).
    t32 = jnp.asarray(t, jnp.float32)
    b_eff = (bias.astype(jnp.float32)
             + t32 * weight_oihw[:, 0, :, :].astype(jnp.float32).sum(axis=(1, 2)))
    b_eff = b_eff.reshape(Cout, 1)

    # im2col in the wrapper (XLA-fused), laid out lane-dense as (K, M) bf16.
    # Flat index k = (kh*KW + kw)*Cin + ci ; row index m = (n*Hout + ho)*Wout + wo.
    x_nhwc = jnp.transpose(x_nchw, (0, 2, 3, 1))                       # (N, H, W, Cin) f32
    pieces = [x_nhwc[:, kh:kh + Hout, kw:kw + Wout, :]
              for kh in range(KH) for kw in range(KW)]                 # each (N, Hout, Wout, Cin)
    patch = jnp.concatenate(pieces, axis=-1)                           # (N, Hout, Wout, K)
    patch_km = patch.reshape(M, K).T.astype(jnp.bfloat16)              # (K, M) bf16

    # Conv weights flattened to match k = (kh*KW + kw)*Cin + ci (data channels only).
    w_flat = (jnp.transpose(weight_oihw[:, 1:, :, :], (0, 2, 3, 1))    # (Cout, KH, KW, Cin)
              .reshape(Cout, K).astype(jnp.bfloat16))                  # (Cout, K) bf16

    flops = 2 * M * K * Cout
    # Padded (tile-aligned) VMEM traffic: bf16 tiles are (16, 128), f32 tiles (8, 128).
    bytes_accessed = (_pad(Cout, 16) * _pad(K, 128) * 2      # weights  bf16
                      + _pad(K, 16) * _pad(M, 128) * 2       # slab     bf16
                      + _pad(Cout, 8) * _pad(1, 128) * 4     # bias     f32
                      + _pad(Cout, 8) * _pad(M, 128) * 4)    # output   f32
    vmem_bytes = max(1 << 20, 4 * bytes_accessed)            # small, honest limit (v7x: 64 MiB total)

    out_cm = pl.pallas_call(
        _concat_conv_matmul_kernel,
        out_shape=jax.ShapeDtypeStruct((Cout, M), jnp.float32),
        in_specs=[
            pl.BlockSpec(memory_space=pltpu.MemorySpace.VMEM),   # weights (Cout, K)
            pl.BlockSpec(memory_space=pltpu.MemorySpace.VMEM),   # im2col slab (K, M)
            pl.BlockSpec(memory_space=pltpu.MemorySpace.VMEM),   # effective bias (Cout, 1)
        ],
        out_specs=pl.BlockSpec(memory_space=pltpu.MemorySpace.VMEM),
        compiler_params=pltpu.CompilerParams(vmem_limit_bytes=int(vmem_bytes)),
        cost_estimate=pl.CostEstimate(flops=flops, transcendentals=0,
                                      bytes_accessed=bytes_accessed),
    )(w_flat, patch_km, b_eff)

    # (Cout, M) -> (Cout, N, Hout, Wout) -> NCHW.
    out = out_cm.reshape(Cout, N, Hout, Wout)
    return jnp.transpose(out, (1, 0, 2, 3))


def _reference(t, x_nchw, weight, bias):
    """Pure-JAX (f32) reference matching the PyTorch forward exactly."""
    tt = jnp.ones_like(x_nchw[:, :1, :, :]) * t
    ttx = jnp.concatenate([tt, x_nchw], axis=1)
    out = lax.conv_general_dilated(ttx, weight, window_strides=(1, 1), padding="VALID",
                                   dimension_numbers=("NCHW", "OIHW", "NCHW"))
    return out + bias.reshape(1, -1, 1, 1)


if __name__ == "__main__":
    # Small shapes consistent with the module: dim_in=4, dim_out=8, ksize=3.
    N, Cin, H, W = 2, 4, 16, 16
    Cout, KH, KW = 8, 3, 3

    key = jax.random.PRNGKey(0)
    k1, k2, k3 = jax.random.split(key, 3)
    x = jax.random.normal(k1, (N, Cin, H, W), jnp.float32)

    # Deterministic Conv2d-style init: U(-1/sqrt(fan_in), 1/sqrt(fan_in)).
    fan_in = (Cin + 1) * KH * KW
    bound = float(1.0 / (fan_in ** 0.5))
    weight = jax.random.uniform(k2, (Cout, Cin + 1, KH, KW), jnp.float32, -bound, bound)
    bias = jax.random.uniform(k3, (Cout,), jnp.float32, -bound, bound)
    t = jnp.float32(0.5)

    out = jax.block_until_ready(concat_conv2d(t, x, weight, bias))
    ref = _reference(t, x, weight, bias)

    assert out.shape == (N, Cout, H - KH + 1, W - KW + 1), out.shape
    # Tolerance reflects bf16 quantization of the MXU operands; accumulation
    # and bias/time terms are f32, so typical max abs error is ~1e-2 against
    # the exact f32 reference.
    assert jnp.allclose(out, ref, rtol=5e-2, atol=5e-2), float(jnp.max(jnp.abs(out - ref)))
    print("KERNEL_OK")
</pallas_src>

<mosaic_0001>
module attributes {stable_mosaic.version = 11 : i64} {
  func.func @_concat_conv_matmul_kernel(%arg0: memref<8x36xbf16, #tpu.memory_space<vmem>>, %arg1: memref<36x392xbf16, #tpu.memory_space<vmem>>, %arg2: memref<8x1xf32, #tpu.memory_space<vmem>>, %arg3: memref<8x392xf32, #tpu.memory_space<vmem>>) attributes {dimension_semantics = [], scalar_prefetch = 0 : i64, scratch_operands = 0 : i64, tpu.core_type = #tpu.core_type<tc>} {
    %c0 = arith.constant 0 : index
    %c0_0 = arith.constant 0 : index
    %0 = vector.load %arg0[%c0, %c0_0] : memref<8x36xbf16, #tpu.memory_space<vmem>>, vector<8x36xbf16>
    %c0_1 = arith.constant 0 : index
    %c0_2 = arith.constant 0 : index
    %1 = vector.load %arg1[%c0_1, %c0_2] : memref<36x392xbf16, #tpu.memory_space<vmem>>, vector<36x392xbf16>
    %cst = arith.constant dense<0.000000e+00> : vector<8x392xf32>
    %2 = tpu.matmul %0, %1, %cst {dimension_numbers = #tpu.dot_dimension_numbers<[1], [0], [0], [1], [0, 0, 1, 1], [], []>} : vector<8x36xbf16>, vector<36x392xbf16>, vector<8x392xf32> -> vector<8x392xf32>
    %c0_3 = arith.constant 0 : index
    %c0_4 = arith.constant 0 : index
    %3 = vector.load %arg2[%c0_3, %c0_4] : memref<8x1xf32, #tpu.memory_space<vmem>>, vector<8x1xf32>
    %4 = vector.broadcast %3 : vector<8x1xf32> to vector<8x392xf32>
    %5 = arith.addf %2, %4 : vector<8x392xf32>
    %c0_5 = arith.constant 0 : index
    %c0_6 = arith.constant 0 : index
    %6 = vector.load %arg3[%c0_5, %c0_6] : memref<8x392xf32, #tpu.memory_space<vmem>>, vector<8x392xf32>
    tpu.vector_store %arg3[%c0_5, %c0_6], %5 {strides = array<i32>} : memref<8x392xf32, #tpu.memory_space<vmem>>, vector<8x392xf32>,
    return
  }
}

</mosaic_0001>

<bundles_post_ra>
// kernel: tpu_custom_call.1
= control target key start
LH: loop header
LB: loop body
LE: loop exit
PB: predicated region body
PF: predicated region fallthrough
CT: control target
= control target key end

     0   :  { %8 = vsyncpa [#allocation3], 0  ;;  %s333_s0 = inlined_call_operand.vmem [shape: bf16[8,36], index: 0, kind: input, shape index: {}]   ;;  %s334_s1 = inlined_call_operand.hbm [shape: bf16[36,392], index: 1, kind: input, shape index: {}]   ;;  %s335_s2 = inlined_call_operand.vmem [shape: f32[8,1], index: 2, kind: input, shape index: {}]   ;;  %s336_s3 = inlined_call_operand.hbm [shape: f32[8,392], index: 3, kind: output, shape index: {}]  }
   0x1   :  { %9 = vsyncpa [#allocation4], 0  ;;  %s16_s14 = sshll.u32 %s334_s1, 4  ;;  %s292_s15 = smov [#allocation2]   ;;  %s17_s14 = int_to_ptr.hbm [resolvable:$true] %s16_s14 }
   0x2   :  { %s18_s16 = sshll.u32 %s292_s15, 4  ;;  %s293_s17 = smov 256   ;;  %s19_s16 = int_to_ptr.vmem [resolvable:$true] %s18_s16 }
   0x3   :  { %s294_s18 = smov 16  }
   0x4   :  { %24 = dma.hbm_to_vmem [thread:$0]  %s17_s14, 1280, %s19_s16, [#allocation3], %s293_s17, %s293_s17, %s294_s18  }
   0x5   :  { %288 = dma.done.wait [#allocation3], 1280  }
   0x6   :  { %289 = vsyncadd [#allocation3], 4294966016  ;;  %v295_v0 = vmov 0   ;;  %v41_v1 = vld [vmem:[#allocation2 + $0x40] sm:$0x33]  ;;  %vm103_vm0 = vcmask 1041408  }
   0x7   :  { %239 = vset.pattern.permute.xlu0 %v295_v0  ;;  %v42_v2 = vld [vmem:[#allocation2 + $0x48] sm:$0x33]  ;;  %v75_v3 = vunpack.c.l.b16 %v41_v1  ;;  %v76_v4 = vunpack.c.h.b16 %v41_v1  ;;  %v208_v7 = vld [vmem:[#allocation2 + $0x20] sm:$0xf]  ;;  %v232_v8 = vld [vmem:[#allocation2 + $0x2c] sm:$0xf0] }
   0x8   :  { %v77_v5 = vunpack.c.l.b16 %v42_v2  ;;  %v78_v6 = vunpack.c.h.b16 %v42_v2  ;;  %v230_v13 = vld [vmem:[#allocation2 + $0x24] sm:$0xf]  ;;  %v210_v14 = vld [vmem:[#allocation2 + $0x30] sm:$0xf0]  ;;  %v216_v15 = vld [vmem:[#allocation2 + $0x28] sm:$0xf]  ;;  %v209_v23 = vor.u32 %v232_v8, %v208_v7 }
   0x9   :  { %v87_v9 = vpack.c.b16 %v75_v3, %v75_v3  ;;  %v88_v10 = vpack.c.b16 %v76_v4, %v76_v4  ;;  %v233_v16 = vld [vmem:[#allocation2 + $0x34] sm:$0xf0]  ;;  %v231_v17 = vld [vmem:[#allocation2 + $0x2c] sm:$0xf]  ;;  %v218_v18 = vld [vmem:[#allocation2 + $0x38] sm:$0xf0]  ;;  %v213_v24 = vor.u32 %v230_v13, %v210_v14 }
   0xa   :  { %v89_v11 = vpack.c.b16 %v77_v5, %v77_v5  ;;  %v90_v12 = vpack.c.b16 %v78_v6, %v78_v6  ;;  %v192_v25 = vld [vmem:[#allocation2] sm:$0xf]  ;;  %v228_v26 = vld [vmem:[#allocation2 + $0xc] sm:$0xf0]  ;;  %v226_v27 = vld [vmem:[#allocation2 + $0x4] sm:$0xf]  ;;  %v217_v28 = vor.u32 %v233_v16, %v216_v15  ;;  %v221_v29 = vor.u32 %v231_v17, %v218_v18 }
   0xb   :  { %v105_v19 = vsel %vm103_vm0, %v87_v9, 0  ;;  %v108_v20 = vsel %vm103_vm0, %v88_v10, 0  ;;  %v194_v30 = vld [vmem:[#allocation2 + $0x10] sm:$0xf0]  ;;  %v200_v31 = vld [vmem:[#allocation2 + $0x8] sm:$0xf]  ;;  %v193_v36 = vor.u32 %v228_v26, %v192_v25 }
   0xc   :  { %v111_v21 = vsel %vm103_vm0, %v89_v11, 0  ;;  %v114_v22 = vsel %vm103_vm0, %v90_v12, 0  ;;  %121 = vmatpush.bf16.msra.mxu0 %v105_v19  ;;  %134 = vmatpush.bf16.msra.mxu1 %v108_v20  ;;  %v43_v32 = vld [vmem:[%s335_s2] sm:$0xff]  ;;  %v229_v33 = vld [vmem:[#allocation2 + $0x14] sm:$0xf0]  ;;  %v197_v37 = vor.u32 %v226_v27, %v194_v30  ;;  %vm99_vm1 = vcmask 293888  }
   0xd   :  { %147 = vmatpush.bf16.msra.mxu2 %v111_v21  ;;  %160 = vmatpush.bf16.msra.mxu3 %v114_v22  ;;  %v227_v34 = vld [vmem:[#allocation2 + $0xc] sm:$0xf]  ;;  %v202_v35 = vld [vmem:[#allocation2 + $0x18] sm:$0xf0]  ;;  %v201_v38 = vor.u32 %v229_v33, %v200_v31  ;;  %v32_v40 = vld [vmem:[%s333_s0] sm:$0xf] }
   0xe   :  { %46 = vperm.xlu0 %239, %v43_v32   ;;  %v205_v39 = vor.u32 %v227_v34, %v202_v35  ;;  %s296_s2 = smov [#allocation5]   ;;  %s180_s0 = sshll.u32 %s336_s3, 4  ;;  %vm171_vm2 = vcmask 64512   ;;  %s181_s0 = int_to_ptr.hbm [resolvable:$true] %s180_s0 }
   0xf   :  { %s178_s22 = sshll.u32 %s296_s2, 4  ;;  %s179_s22 = int_to_ptr.vmem [resolvable:$true] %s178_s22 }
  0x10   :  { %122 = vmatpush.bf16.msra.mxu0 %v209_v23  ;;  %135 = vmatpush.bf16.msra.mxu1 %v213_v24 }
  0x11   :  { %148 = vmatpush.bf16.msra.mxu2 %v217_v28  ;;  %161 = vmatpush.bf16.msra.mxu3 %v221_v29 }
  0x14   :  { %123 = vmatpush.bf16.msra.mxu0 %v193_v36  ;;  %136 = vmatpush.bf16.msra.mxu1 %v197_v37 }
  0x15   :  { %149 = vmatpush.bf16.msra.mxu2 %v201_v38  ;;  %162 = vmatpush.bf16.msra.mxu3 %v205_v39 }
  0x17   :  { %222 = vmatmul.msk.bf16.vlgmr.msra.gmra.mxu0 %vm99_vm1, %v32_v40  ;;  %223 = vmatmul.msk.bf16.vlgmr.msra.gmra.mxu1 %vm99_vm1, %v32_v40 }
  0x18   :  { %224 = vmatmul.msk.bf16.vlgmr.msra.gmra.mxu2 %vm99_vm1, %v32_v40  ;;  %225 = vmatmul.msk.bf16.vlgmr.msra.gmra.mxu3 %vm99_vm1, %v32_v40 }
  0x80   :  { %v47_v41 = vpop.permute.xlu0 %46 }
  0x94   :  { %v125_v42 = vpop.f32.mrf.mxu0  ;;  %v138_v43 = vpop.f32.mrf.mxu1 }
  0x95   :  { %v126_v44 = vadd.f32 %v125_v42, %v47_v41  ;;  %v139_v45 = vadd.f32 %v138_v43, %v47_v41 }
  0x97   :  { %168 = vst [vmem:[#allocation5] sm:$0xff] %v126_v44 }
  0x98   :  { %169 = vst [vmem:[#allocation5 + $0x8] sm:$0xff] %v139_v45 }
  0x9b   :  { %v151_v46 = vpop.f32.mrf.mxu2  ;;  %v164_v47 = vpop.f32.mrf.mxu3 }
  0x9c   :  { %v152_v48 = vadd.f32 %v151_v46, %v47_v41  ;;  %v165_v49 = vadd.f32 %v164_v47, %v47_v41  ;;  %v127_v50 = vpop.f32.mrf.mxu0  ;;  %v140_v51 = vpop.f32.mrf.mxu1 }
  0x9e   :  { %170 = vst [vmem:[#allocation5 + $0x10] sm:$0xff] %v152_v48 }
  0x9f   :  { %172 = vst.msk [vmem:[#allocation5 + $0x18] sm:$0xff] %vm171_vm2, %v165_v49 }
  0xa0   :  { %183 = dma.vmem_to_hbm [thread:$0]  %s179_s22, 512, %s181_s0, [#allocation4]  }
  0xa3   :  { %v153_v52 = vpop.f32.mrf.mxu2  ;;  %v166_v53 = vpop.f32.mrf.mxu3 }
  0xa4   :  { %290 = dma.done.wait [#allocation4], 512  }
  0xa5   :  { %291 = vsyncadd [#allocation4], 4294966784 }
  0xa6   :  { %188 = vsyncpa [#allocation3], 1 }
  0xa7   :  { %189 = vsyncpa [#allocation4], 1 }

</bundles_post_ra>
